<compile_context>
chip_gen: v7x
topology: tpu7x:2x2x1
jax: 0.10.0
libtpu: 0.0.40
codegen_flags: <defaults>
</compile_context>

<pallas_src>
import math

import jax
import jax.numpy as jnp
from jax.experimental import pallas as pl
from jax.experimental.pallas import tpu as pltpu

_LANE = 128
_EPS = 1e-5  # PyTorch BatchNorm1d default


def _round_up(v, m):
    return (v + m - 1) // m * m


def _cdiv(a, b):
    return -(-a // b)


# --------------------------- kernels ---------------------------------------


def _stats_kernel(x_ref, w1t_ref, stats_ref):
    """Accumulate per-feature [sum | sum-of-squares] of h = x @ W1t.

    x is read in f32 and cast to bf16 here (no wrapper-side copy); h is NOT
    written back to HBM -- pass 2 recomputes it.
    """

    @pl.when(pl.program_id(1) == 0)
    def _():
        stats_ref[...] = jnp.zeros_like(stats_ref)

    h = jnp.dot(x_ref[...].astype(jnp.bfloat16), w1t_ref[...],
                preferred_element_type=jnp.float32)

    # Column sums via a ones-row MXU contraction: the kernel is HBM-bound at
    # these widths, so the two tiny M=1 matmuls are free filler on the MXU.
    tn, hp = h.shape
    ones_row = jnp.ones((1, tn), jnp.float32)
    s = jnp.dot(ones_row, h, preferred_element_type=jnp.float32)
    ss = jnp.dot(ones_row, h * h, preferred_element_type=jnp.float32)
    stats_ref[:, :hp] = stats_ref[:, :hp] + s
    stats_ref[:, hp:] = stats_ref[:, hp:] + ss


def _fused_fwd_kernel(x_ref, w1t_ref, scale_ref, shift_ref, w2t_ref, b2_ref, o_ref):
    """out = ReLU((x @ W1t) * scale + shift) @ W2t + b2 (BN folded to one FMA)."""
    h = jnp.dot(x_ref[...].astype(jnp.bfloat16), w1t_ref[...],
                preferred_element_type=jnp.float32)
    a = jnp.maximum(h * scale_ref[...] + shift_ref[...], 0.0)
    o_ref[...] = (
        jnp.dot(a.astype(w2t_ref.dtype), w2t_ref[...],
                preferred_element_type=jnp.float32)
        + b2_ref[...]
    ).astype(o_ref.dtype)


# --------------------------- wrapper ----------------------------------------


def prepare_params(params):
    """One-time prep: transpose, zero-pad OUTPUT feature dims to 128, cast to bf16."""
    w1 = params["w1"]  # (hid, in_feats)  -- PyTorch (out, in) layout
    w2 = params["w2"]  # (out_feats, hid)
    hid, in_f = w1.shape
    out_f = w2.shape[0]
    hp = _round_up(hid, _LANE)
    op = _round_up(out_f, _LANE)

    # Contracted dims (in_f for W1t, zero-padded hid rows for W2t) need no lane
    # padding for the MXU; only the output feature dims are padded so stores
    # stay lane-dense.
    w1t = jnp.zeros((in_f, hp), jnp.bfloat16).at[:, :hid].set(
        w1.T.astype(jnp.bfloat16))
    w2t = jnp.zeros((hp, op), jnp.bfloat16).at[:hid, :out_f].set(
        w2.T.astype(jnp.bfloat16))
    gamma = jnp.zeros((1, hp), jnp.float32).at[0, :hid].set(params["bn_gamma"])
    beta = jnp.zeros((1, hp), jnp.float32).at[0, :hid].set(params["bn_beta"])
    b2 = jnp.zeros((1, op), jnp.float32).at[0, :out_f].set(params["b2"])
    # params["b1"] intentionally unused: exactly cancelled by batch-stats BN.
    return {"w1t": w1t, "w2t": w2t, "bn_gamma": gamma, "bn_beta": beta, "b2": b2}


def _vmem_limit_bytes():
    """Generation-aware VMEM budget: ~75% of physical (v5e/v6e 128 MiB -> 96 MiB,
    v7x 64 MiB -> 48 MiB); conservative fallback if the query is unavailable."""
    try:
        cap = getattr(pltpu.get_tpu_info(), "vmem_capacity_bytes", None)
    except Exception:
        cap = None
    return int(0.75 * cap) if cap else 48 * 1024 * 1024


def _pick_block_n(in_f, hp, op, vmem_limit, cap=2048):
    """Derive the batch tile from the VMEM budget (fewer, larger DMAs)."""
    # Per-row bytes: double-buffered x (f32) and out (f32) tiles plus f32
    # temporaries for h and the activated tensor inside the fused pass.
    per_row = 4 * (2 * in_f + 2 * op + 4 * hp)
    fixed = 2 * 2 * (in_f * hp + hp * op) + 4 * (4 * hp + op)  # bf16 weights x2 bufs + vectors
    budget = vmem_limit // 2 - fixed
    bn = max(256, min(cap, budget // per_row))
    return (bn // 256) * 256


def mlp_forward(x, prep, *, out_feats, block_n=None):
    """x: (N, in_feats) f32; prep: prepare_params output. Returns (N, out_feats) f32."""
    n, in_f = x.shape
    hp = prep["w1t"].shape[1]
    op = prep["w2t"].shape[1]

    vmem_limit = _vmem_limit_bytes()
    if block_n is None:
        block_n = _pick_block_n(in_f, hp, op, vmem_limit)

    tn = min(block_n, _round_up(n, 8))
    n_tiles = _cdiv(n, tn)
    num_cores = 2 if n_tiles >= 2 else 1          # megacore split of pass 1 (v7x)
    tiles_per_core = _cdiv(n_tiles, num_cores)
    n_pad = num_cores * tiles_per_core * tn

    # Row-pad only when the batch doesn't tile evenly. Zero rows contribute
    # nothing to the statistics (divide by true n below); their outputs are
    # sliced off at the end. No lane padding / dtype cast of x here.
    x_in = x if n_pad == n else jnp.zeros((n_pad, in_f), x.dtype).at[:n].set(x)

    # ---- Pass 1: per-core partial [sum | sumsq] of h = x @ W1t (no h writeback).
    stats = pl.pallas_call(
        _stats_kernel,
        out_shape=jax.ShapeDtypeStruct((1, num_cores * 2 * hp), jnp.float32),
        grid=(num_cores, tiles_per_core),
        in_specs=[
            pl.BlockSpec((tn, in_f), lambda c, i: (c * tiles_per_core + i, 0)),
            pl.BlockSpec((in_f, hp), lambda c, i: (0, 0)),
        ],
        out_specs=pl.BlockSpec((1, 2 * hp), lambda c, i: (0, c)),
        compiler_params=pltpu.CompilerParams(
            dimension_semantics=("parallel", "arbitrary"),
            vmem_limit_bytes=vmem_limit),
    )(x_in, prep["w1t"])

    # ---- Tiny JAX glue: merge per-core partials, fold stats + gamma/beta into
    # the coefficients of a single FMA.
    stats = jnp.sum(stats.reshape(num_cores, 2 * hp), axis=0, keepdims=True)
    inv_n = 1.0 / float(n)                     # true batch size
    mean = stats[:, :hp] * inv_n
    # TODO(synk): E[h^2]-E[h]^2 in one f32 pass can cancel for very large batch /
    # large |mean|; switch to per-tile Welford merge if tolerances tighten.
    var = jnp.maximum(stats[:, hp:] * inv_n - mean * mean, 0.0)
    scale = prep["bn_gamma"] * jax.lax.rsqrt(var + _EPS)
    shift = prep["bn_beta"] - mean * scale

    # ---- Pass 2: recompute h, BN (FMA) + ReLU + output matmul, lane-dense out.
    total_tiles = n_pad // tn
    out_pad = pl.pallas_call(
        _fused_fwd_kernel,
        out_shape=jax.ShapeDtypeStruct((n_pad, op), jnp.float32),
        grid=(total_tiles,),
        in_specs=[
            pl.BlockSpec((tn, in_f), lambda i: (i, 0)),
            pl.BlockSpec((in_f, hp), lambda i: (0, 0)),
            pl.BlockSpec((1, hp), lambda i: (0, 0)),
            pl.BlockSpec((1, hp), lambda i: (0, 0)),
            pl.BlockSpec((hp, op), lambda i: (0, 0)),
            pl.BlockSpec((1, op), lambda i: (0, 0)),
        ],
        out_specs=pl.BlockSpec((tn, op), lambda i: (i, 0)),
        compiler_params=pltpu.CompilerParams(
            dimension_semantics=("parallel",),       # megacore-shardable on v7x
            vmem_limit_bytes=vmem_limit),
    )(x_in, prep["w1t"], scale, shift, prep["w2t"], prep["b2"])

    if n_pad == n and op == out_feats:
        return out_pad
    # TODO(synk): callers that accept the lane-padded (n_pad, op) buffer can skip
    # this slice (or alias a padded output) to avoid the extra HBM read+write.
    return out_pad[:n, :out_feats]


# --------------------------- init + reference -------------------------------


def kaiming_uniform(key, out_f, in_f):
    # PyTorch kaiming_uniform_(mode='fan_in', nonlinearity='relu'):
    # bound = sqrt(2) * sqrt(3 / fan_in)
    bound = math.sqrt(2.0) * math.sqrt(3.0 / in_f)
    return jax.random.uniform(key, (out_f, in_f), jnp.float32, -bound, bound)


def linear_bias(key, out_f, in_f):
    # PyTorch default Linear bias init: U(-1/sqrt(fan_in), 1/sqrt(fan_in))
    bound = 1.0 / math.sqrt(in_f)
    return jax.random.uniform(key, (out_f,), jnp.float32, -bound, bound)


def init_params(key, in_feats=64, out_feats=64, h_layers=2):
    # Defaults (pyramid=False -> delta_dims=0, h_layers=2): one hidden block
    # Linear(in,in) -> BatchNorm1d(in) -> ReLU, then Linear(in,out).
    assert h_layers == 2  # TODO(synk): generalize to >1 hidden block
    k1, k2, k3, k4 = jax.random.split(key, 4)
    return {
        "w1": kaiming_uniform(k1, in_feats, in_feats),
        "b1": linear_bias(k2, in_feats, in_feats),
        "bn_gamma": jnp.ones((in_feats,), jnp.float32),
        "bn_beta": jnp.zeros((in_feats,), jnp.float32),
        "w2": kaiming_uniform(k3, out_feats, in_feats),
        "b2": linear_bias(k4, out_feats, in_feats),
    }


def mlp_reference(x, params):
    """Pure-JAX f32 reference matching PyTorch training-mode forward (incl. b1)."""
    h = x @ params["w1"].T + params["b1"]
    mean = h.mean(axis=0, keepdims=True)
    var = ((h - mean) ** 2).mean(axis=0, keepdims=True)  # biased, as PyTorch BN
    h = (h - mean) * jax.lax.rsqrt(var + _EPS) * params["bn_gamma"] + params["bn_beta"]
    h = jnp.maximum(h, 0.0)
    return h @ params["w2"].T + params["b2"]


if __name__ == "__main__":
    key = jax.random.PRNGKey(0)
    kx, kp, kx2 = jax.random.split(key, 3)

    in_feats, out_feats = 64, 64
    params = init_params(kp, in_feats=in_feats, out_feats=out_feats, h_layers=2)
    prep = prepare_params(params)
    fwd = jax.jit(mlp_forward, static_argnames=("out_feats", "block_n"))

    # Small smoke test (single tile, no padding, no core split).
    batch = 8
    x = jax.random.normal(kx, (batch, in_feats), jnp.float32)
    out = fwd(x, prep, out_feats=out_feats)
    jax.block_until_ready(out)
    assert out.shape == (batch, out_feats) and out.dtype == jnp.float32
    ref = mlp_reference(x, params)
    err = float(jnp.max(jnp.abs(out - ref)))
    assert jnp.allclose(out, ref, rtol=5e-2, atol=5e-2), f"max abs err {err}"

    # Larger test exercising batch tiling, zero-row padding and the per-core
    # partial-stats path (grid=(2, 2) with tn=128).
    batch2 = 300
    x2 = jax.random.normal(kx2, (batch2, in_feats), jnp.float32)
    out2 = fwd(x2, prep, out_feats=out_feats, block_n=128)
    jax.block_until_ready(out2)
    assert out2.shape == (batch2, out_feats) and out2.dtype == jnp.float32
    ref2 = mlp_reference(x2, params)
    err2 = float(jnp.max(jnp.abs(out2 - ref2)))
    assert jnp.allclose(out2, ref2, rtol=5e-2, atol=5e-2), f"max abs err {err2}"

    print("KERNEL_OK")
</pallas_src>

<mosaic_0001>
module attributes {stable_mosaic.version = 11 : i64} {
  func.func @_fused_fwd_kernel(%arg0: i32, %arg1: memref<8x64xf32, #tpu.memory_space<vmem>>, %arg2: memref<64x128xbf16, #tpu.memory_space<vmem>>, %arg3: memref<1x128xf32, #tpu.memory_space<vmem>>, %arg4: memref<1x128xf32, #tpu.memory_space<vmem>>, %arg5: memref<128x128xbf16, #tpu.memory_space<vmem>>, %arg6: memref<1x128xf32, #tpu.memory_space<vmem>>, %arg7: memref<8x128xf32, #tpu.memory_space<vmem>>) attributes {dimension_semantics = [#tpu.dimension_semantics<parallel>], iteration_bounds = array<i64: 1>, scalar_prefetch = 0 : i64, scratch_operands = 0 : i64, tpu.core_type = #tpu.core_type<tc>, window_params = [{transform_indices = @transform_0, window_bounds = array<i64: 8, 64>}, {pipeline_mode = #tpu.pipeline_mode<synchronous>, transform_indices = @transform_1, window_bounds = array<i64: 64, 128>}, {pipeline_mode = #tpu.pipeline_mode<synchronous>, transform_indices = @transform_2, window_bounds = array<i64: 1, 128>}, {pipeline_mode = #tpu.pipeline_mode<synchronous>, transform_indices = @transform_3, window_bounds = array<i64: 1, 128>}, {pipeline_mode = #tpu.pipeline_mode<synchronous>, transform_indices = @transform_4, window_bounds = array<i64: 128, 128>}, {pipeline_mode = #tpu.pipeline_mode<synchronous>, transform_indices = @transform_5, window_bounds = array<i64: 1, 128>}, {transform_indices = @transform_6, window_bounds = array<i64: 8, 128>}]} {
    %c0 = arith.constant 0 : index
    %c0_0 = arith.constant 0 : index
    %0 = vector.load %arg1[%c0, %c0_0] : memref<8x64xf32, #tpu.memory_space<vmem>>, vector<8x64xf32>
    %1 = arith.truncf %0 : vector<8x64xf32> to vector<8x64xbf16>
    %c0_1 = arith.constant 0 : index
    %c0_2 = arith.constant 0 : index
    %2 = vector.load %arg2[%c0_1, %c0_2] : memref<64x128xbf16, #tpu.memory_space<vmem>>, vector<64x128xbf16>
    %cst = arith.constant dense<0.000000e+00> : vector<8x128xf32>
    %3 = tpu.matmul %1, %2, %cst {dimension_numbers = #tpu.dot_dimension_numbers<[1], [0], [0], [1], [0, 0, 1, 1], [], []>} : vector<8x64xbf16>, vector<64x128xbf16>, vector<8x128xf32> -> vector<8x128xf32>
    %c0_3 = arith.constant 0 : index
    %c0_4 = arith.constant 0 : index
    %4 = vector.load %arg3[%c0_3, %c0_4] : memref<1x128xf32, #tpu.memory_space<vmem>>, vector<1x128xf32>
    %5 = vector.broadcast %4 : vector<1x128xf32> to vector<8x128xf32>
    %6 = arith.mulf %3, %5 : vector<8x128xf32>
    %c0_5 = arith.constant 0 : index
    %c0_6 = arith.constant 0 : index
    %7 = vector.load %arg4[%c0_5, %c0_6] : memref<1x128xf32, #tpu.memory_space<vmem>>, vector<1x128xf32>
    %8 = vector.broadcast %7 : vector<1x128xf32> to vector<8x128xf32>
    %9 = arith.addf %6, %8 : vector<8x128xf32>
    %cst_7 = arith.constant 0.000000e+00 : f32
    %10 = vector.broadcast %cst_7 : f32 to vector<8x128xf32>
    %11 = arith.maximumf %9, %10 : vector<8x128xf32>
    %12 = arith.truncf %11 : vector<8x128xf32> to vector<8x128xbf16>
    %c0_8 = arith.constant 0 : index
    %c0_9 = arith.constant 0 : index
    %13 = vector.load %arg5[%c0_8, %c0_9] : memref<128x128xbf16, #tpu.memory_space<vmem>>, vector<128x128xbf16>
    %cst_10 = arith.constant dense<0.000000e+00> : vector<8x128xf32>
    %14 = tpu.matmul %12, %13, %cst_10 {dimension_numbers = #tpu.dot_dimension_numbers<[1], [0], [0], [1], [0, 0, 1, 1], [], []>} : vector<8x128xbf16>, vector<128x128xbf16>, vector<8x128xf32> -> vector<8x128xf32>
    %c0_11 = arith.constant 0 : index
    %c0_12 = arith.constant 0 : index
    %15 = vector.load %arg6[%c0_11, %c0_12] : memref<1x128xf32, #tpu.memory_space<vmem>>, vector<1x128xf32>
    %16 = vector.broadcast %15 : vector<1x128xf32> to vector<8x128xf32>
    %17 = arith.addf %14, %16 : vector<8x128xf32>
    %c0_13 = arith.constant 0 : index
    %c0_14 = arith.constant 0 : index
    %18 = vector.load %arg7[%c0_13, %c0_14] : memref<8x128xf32, #tpu.memory_space<vmem>>, vector<8x128xf32>
    tpu.vector_store %arg7[%c0_13, %c0_14], %17 {strides = array<i32>} : memref<8x128xf32, #tpu.memory_space<vmem>>, vector<8x128xf32>,
    return
  }
  func.func @transform_0(%arg0: i32) -> (i32, i32) {
    %c0_i32 = arith.constant 0 : i32
    %c0_i32_0 = arith.constant 0 : i32
    return %arg0, %c0_i32 : i32, i32
  }
  func.func @transform_1(%arg0: i32) -> (i32, i32) {
    %c0_i32 = arith.constant 0 : i32
    %c0_i32_0 = arith.constant 0 : i32
    %c0_i32_1 = arith.constant 0 : i32
    return %c0_i32, %c0_i32_0 : i32, i32
  }
  func.func @transform_2(%arg0: i32) -> (i32, i32) {
    %c0_i32 = arith.constant 0 : i32
    %c0_i32_0 = arith.constant 0 : i32
    %c0_i32_1 = arith.constant 0 : i32
    return %c0_i32, %c0_i32_0 : i32, i32
  }
  func.func @transform_3(%arg0: i32) -> (i32, i32) {
    %c0_i32 = arith.constant 0 : i32
    %c0_i32_0 = arith.constant 0 : i32
    %c0_i32_1 = arith.constant 0 : i32
    return %c0_i32, %c0_i32_0 : i32, i32
  }
  func.func @transform_4(%arg0: i32) -> (i32, i32) {
    %c0_i32 = arith.constant 0 : i32
    %c0_i32_0 = arith.constant 0 : i32
    %c0_i32_1 = arith.constant 0 : i32
    return %c0_i32, %c0_i32_0 : i32, i32
  }
  func.func @transform_5(%arg0: i32) -> (i32, i32) {
    %c0_i32 = arith.constant 0 : i32
    %c0_i32_0 = arith.constant 0 : i32
    %c0_i32_1 = arith.constant 0 : i32
    return %c0_i32, %c0_i32_0 : i32, i32
  }
  func.func @transform_6(%arg0: i32) -> (i32, i32) {
    %c0_i32 = arith.constant 0 : i32
    %c0_i32_0 = arith.constant 0 : i32
    return %arg0, %c0_i32 : i32, i32
  }
}

module attributes {stable_mosaic.version = 11 : i64} {
  func.func @_stats_kernel(%arg0: i32, %arg1: i32, %arg2: memref<8x64xf32, #tpu.memory_space<vmem>>, %arg3: memref<64x128xbf16, #tpu.memory_space<vmem>>, %arg4: memref<1x256xf32, #tpu.memory_space<vmem>>) attributes {dimension_semantics = [#tpu.dimension_semantics<parallel>, #tpu.dimension_semantics<arbitrary>], iteration_bounds = array<i64: 1, 1>, scalar_prefetch = 0 : i64, scratch_operands = 0 : i64, tpu.core_type = #tpu.core_type<tc>, window_params = [{transform_indices = @transform_0, window_bounds = array<i64: 8, 64>}, {pipeline_mode = #tpu.pipeline_mode<synchronous>, transform_indices = @transform_1, window_bounds = array<i64: 64, 128>}, {transform_indices = @transform_2, window_bounds = array<i64: 1, 256>}]} {
    %c0_i32 = arith.constant 0 : i32
    %0 = arith.cmpi eq, %arg1, %c0_i32 : i32
    %1 = arith.extui %0 : i1 to i32
    %c0_i32_0 = arith.constant 0 : i32
    %2 = arith.cmpi ne, %1, %c0_i32_0 : i32
    scf.if %2 {
      %cst_14 = arith.constant 0.000000e+00 : f32
      %17 = vector.broadcast %cst_14 : f32 to vector<1x256xf32>
      %c0_15 = arith.constant 0 : index
      %c0_16 = arith.constant 0 : index
      %18 = vector.load %arg4[%c0_15, %c0_16] : memref<1x256xf32, #tpu.memory_space<vmem>>, vector<1x256xf32>
      tpu.vector_store %arg4[%c0_15, %c0_16], %17 {strides = array<i32>} : memref<1x256xf32, #tpu.memory_space<vmem>>, vector<1x256xf32>,
    } else {
    }
    %c0 = arith.constant 0 : index
    %c0_1 = arith.constant 0 : index
    %3 = vector.load %arg2[%c0, %c0_1] : memref<8x64xf32, #tpu.memory_space<vmem>>, vector<8x64xf32>
    %4 = arith.truncf %3 : vector<8x64xf32> to vector<8x64xbf16>
    %c0_2 = arith.constant 0 : index
    %c0_3 = arith.constant 0 : index
    %5 = vector.load %arg3[%c0_2, %c0_3] : memref<64x128xbf16, #tpu.memory_space<vmem>>, vector<64x128xbf16>
    %cst = arith.constant dense<0.000000e+00> : vector<8x128xf32>
    %6 = tpu.matmul %4, %5, %cst {dimension_numbers = #tpu.dot_dimension_numbers<[1], [0], [0], [1], [0, 0, 1, 1], [], []>} : vector<8x64xbf16>, vector<64x128xbf16>, vector<8x128xf32> -> vector<8x128xf32>
    %cst_4 = arith.constant 1.000000e+00 : f32
    %7 = vector.broadcast %cst_4 : f32 to vector<1x8xf32>
    %cst_5 = arith.constant dense<0.000000e+00> : vector<1x128xf32>
    %8 = tpu.matmul %7, %6, %cst_5 {dimension_numbers = #tpu.dot_dimension_numbers<[1], [0], [0], [1], [0, 0, 1, 1], [], []>} : vector<1x8xf32>, vector<8x128xf32>, vector<1x128xf32> -> vector<1x128xf32>
    %9 = arith.mulf %6, %6 : vector<8x128xf32>
    %cst_6 = arith.constant dense<0.000000e+00> : vector<1x128xf32>
    %10 = tpu.matmul %7, %9, %cst_6 {dimension_numbers = #tpu.dot_dimension_numbers<[1], [0], [0], [1], [0, 0, 1, 1], [], []>} : vector<1x8xf32>, vector<8x128xf32>, vector<1x128xf32> -> vector<1x128xf32>
    %c0_7 = arith.constant 0 : index
    %c0_8 = arith.constant 0 : index
    %11 = vector.load %arg4[%c0_7, %c0_8] : memref<1x256xf32, #tpu.memory_space<vmem>>, vector<1x128xf32>
    %12 = arith.addf %11, %8 : vector<1x128xf32>
    %c0_9 = arith.constant 0 : index
    %c0_10 = arith.constant 0 : index
    %13 = vector.load %arg4[%c0_9, %c0_10] : memref<1x256xf32, #tpu.memory_space<vmem>>, vector<1x128xf32>
    tpu.vector_store %arg4[%c0_9, %c0_10], %12 {strides = array<i32>} : memref<1x256xf32, #tpu.memory_space<vmem>>, vector<1x128xf32>,
    %c0_11 = arith.constant 0 : index
    %c128 = arith.constant 128 : index
    %14 = vector.load %arg4[%c0_11, %c128] : memref<1x256xf32, #tpu.memory_space<vmem>>, vector<1x128xf32>
    %15 = arith.addf %14, %10 : vector<1x128xf32>
    %c0_12 = arith.constant 0 : index
    %c128_13 = arith.constant 128 : index
    %16 = vector.load %arg4[%c0_12, %c128_13] : memref<1x256xf32, #tpu.memory_space<vmem>>, vector<1x128xf32>
    tpu.vector_store %arg4[%c0_12, %c128_13], %15 {strides = array<i32>} : memref<1x256xf32, #tpu.memory_space<vmem>>, vector<1x128xf32>,
    return
  }
  func.func @transform_0(%arg0: i32, %arg1: i32) -> (i32, i32) {
    %c1_i32 = arith.constant 1 : i32
    %0 = arith.muli %arg0, %c1_i32 : i32
    %1 = arith.addi %0, %arg1 : i32
    %c0_i32 = arith.constant 0 : i32
    %c0_i32_0 = arith.constant 0 : i32
    return %1, %c0_i32 : i32, i32
  }
  func.func @transform_1(%arg0: i32, %arg1: i32) -> (i32, i32) {
    %c0_i32 = arith.constant 0 : i32
    %c0_i32_0 = arith.constant 0 : i32
    %c0_i32_1 = arith.constant 0 : i32
    return %c0_i32, %c0_i32_0 : i32, i32
  }
  func.func @transform_2(%arg0: i32, %arg1: i32) -> (i32, i32) {
    %c0_i32 = arith.constant 0 : i32
    %c0_i32_0 = arith.constant 0 : i32
    return %c0_i32, %arg0 : i32, i32
  }
}

</mosaic_0001>

<bundles_post_ra>
// kernel: mlp_forward.3
= control target key start
LH: loop header
LB: loop body
LE: loop exit
PB: predicated region body
PF: predicated region fallthrough
CT: control target
= control target key end

     0   :  { %11 = vsyncpa [#allocation3], 0  ;;  %s479_s0 = inlined_call_operand.vmem [shape: f32[8,64], index: 0, kind: input, shape index: {}]   ;;  %s480_s1 = inlined_call_operand.vmem [shape: bf16[64,128], index: 1, kind: input, shape index: {}]   ;;  %s481_s2 = inlined_call_operand.vmem [shape: f32[1,128], index: 2, kind: input, shape index: {}]   ;;  %s482_s3 = inlined_call_operand.vmem [shape: f32[1,128], index: 3, kind: input, shape index: {}]   ;;  %s483_s4 = inlined_call_operand.hbm [shape: bf16[128,128], index: 4, kind: input, shape index: {}]   ;;  %s484_s5 = inlined_call_operand.vmem [shape: f32[1,128], index: 5, kind: input, shape index: {}]   ;;  %s485_s6 = inlined_call_operand.hbm [shape: f32[8,128], index: 6, kind: output, shape index: {}]  }
   0x1   :  { %12 = vsyncpa [#allocation4], 0  ;;  %s390_s21 = smov [#allocation2]   ;;  %s342_s25 = scalar_lea.hbm %s483_s4, 1024 }
   0x2   :  { %s26_s22 = sshll.u32 %s390_s21, 4  ;;  %p343_p0 = scmp.ne.s32.totalorder %s483_s4, %s342_s25  ;;  %s27_s22 = int_to_ptr.vmem [resolvable:$true] %s26_s22 }
   0x3   :  { %p346_p1 = scmp.lt.u32.totalorder %s342_s25, %s483_s4 }
   0x5   :  { %p348_p2 = pnand %p346_p1, %p343_p0 }
   0x7   :  { %351 = shalt.err (!%p348_p2)
}
   0x8   :  { %s352_s30 = scalar_lea.vmem %s27_s22, 1024  ;;  %p357_p4 = scmp.lt.s32.totalorder %s27_s22, %s27_s22 }
   0x9   :  { %p353_p3 = scmp.ne.s32.totalorder %s27_s22, %s352_s30  ;;  %p358_p5 = scmp.lt.s32.totalorder %s352_s30, %s352_s30 }
   0xb   :  { %p359_p6 = por %p358_p5, %p357_p4 }
   0xd   :  { %p360_p7 = pnand %p359_p6, %p353_p3 }
   0xf   :  { %363 = shalt.err (!%p360_p7)
}
  0x10   :  { %s391_s7 = smov 64   ;;  %s392_s8 = smov 4  }
  0x11   :  { %32 = dma.hbm_to_vmem [thread:$0]  %s483_s4, 1024, %s27_s22, [#allocation3], %s391_s7, %s391_s7, %s392_s8  }
  0x12   :  { %386 = dma.done.wait [#allocation3], 1024  }
  0x13   :  { %387 = vsyncadd [#allocation3], 4294966272  ;;  %v393_v0 = vmov 0.0   ;;  %vm394_vm0 = vmmov 0   ;;  %v330_v1 = vld [vmem:[%s480_s1] sm:$0xff]   ;;  %v331_v2 = vld [vmem:[%s480_s1 + $0x8] sm:$0xff]  }
  0x14   :  { %292 = vmatprep.subr.bf16.mxu0 %v393_v0  ;;  %300 = vmatprep.mubr.msk.bf16.mxu0 %vm394_vm0, %v393_v0  ;;  %v334_v3 = vld [vmem:[#allocation2] sm:$0xff]   ;;  %v332_v4 = vld [vmem:[%s480_s1 + $0x10] sm:$0xff]   ;;  %v335_v5 = vld [vmem:[#allocation2 + $0x8] sm:$0xff]   ;;  %vm73_vm1 = vcmask 523264   ;;  %s395_s24 = smov [#allocation5]  }
  0x15   :  { %304 = vmatprep.subr.bf16.mxu1 %v393_v0  ;;  %320 = vmatprep.mubr.msk.bf16.mxu1 %vm394_vm0, %v393_v0  ;;  %v333_v6 = vld [vmem:[%s480_s1 + $0x18] sm:$0xff]   ;;  %v39_v7 = vld [vmem:[%s479_s0] sm:$0xff]  ;;  %v336_v8 = vld [vmem:[#allocation2 + $0x10] sm:$0xff]   ;;  %s253_s25 = sshll.u32 %s395_s24, 4  ;;  %s254_s25 = int_to_ptr.vmem [resolvable:$true] %s253_s25 }
  0x16   :  { %293 = vmatpush3.bf16.msra.mxu0 %v330_v1  ;;  %305 = vmatpush3.bf16.msra.mxu1 %v334_v3  ;;  %v40_v9 = vpack.c.bf16 %v39_v7, %v39_v7  ;;  %v337_v10 = vld [vmem:[#allocation2 + $0x18] sm:$0xff]   ;;  %v338_v11 = vld [vmem:[#allocation2 + $0x20] sm:$0xff]   ;;  %v339_v12 = vld [vmem:[#allocation2 + $0x28] sm:$0xff]   ;;  %p369_p9 = scmp.lt.s32.totalorder %s254_s25, %s254_s25 }
  0x17   :  { %294 = vmatprep.subr.bf16.mxu0 %v393_v0  ;;  %306 = vmatprep.subr.bf16.mxu1 %v393_v0  ;;  %v340_v13 = vld [vmem:[#allocation2 + $0x30] sm:$0xff]   ;;  %v341_v14 = vld [vmem:[#allocation2 + $0x38] sm:$0xff]   ;;  %v267_v15 = vld [vmem:[%s481_s2] ss:$0 sm:$0xff]  ;;  %s364_s2 = scalar_lea.vmem %s254_s25, 128 }
  0x18   :  { %v268_v17 = vld [vmem:[%s482_s3] ss:$0 sm:$0xff]  ;;  %p365_p8 = scmp.ne.s32.totalorder %s254_s25, %s364_s2  ;;  %p370_p10 = scmp.lt.s32.totalorder %s364_s2, %s364_s2 }
  0x19   :  { %v269_v25 = vld [vmem:[%s484_s5] ss:$0 sm:$0xff] }
  0x1a   :  { %295 = vmatpush3.bf16.msra.mxu0 %v331_v2  ;;  %307 = vmatpush3.bf16.msra.mxu1 %v335_v5  ;;  %p371_p11 = por %p370_p10, %p369_p9 }
  0x1b   :  { %296 = vmatprep.subr.bf16.mxu0 %v393_v0  ;;  %308 = vmatprep.subr.bf16.mxu1 %v393_v0 }
  0x1c   :  { %p372_p12 = pnand %p371_p11, %p365_p8 }
  0x1e   :  { %297 = vmatpush3.bf16.msra.mxu0 %v332_v4  ;;  %309 = vmatpush3.bf16.msra.mxu1 %v336_v8 }
  0x1f   :  { %298 = vmatprep.subr.bf16.mxu0 %v393_v0  ;;  %310 = vmatprep.subr.bf16.mxu1 %v393_v0 }
  0x22   :  { %299 = vmatpush3.bf16.msra.mxu0 %v333_v6  ;;  %311 = vmatpush3.bf16.msra.mxu1 %v337_v10 }
  0x23   :  { %312 = vmatprep.subr.bf16.mxu1 %v393_v0 }
  0x25   :  { %301 = vmatmul.mubr.msk.bf16.vlgmr.msra.gmra.mrb[0].mxu0 %vm73_vm1, %v40_v9 }
  0x26   :  { %313 = vmatpush3.bf16.msra.mxu1 %v338_v11 }
  0x27   :  { %314 = vmatprep.subr.bf16.mxu1 %v393_v0 }
  0x2a   :  { %315 = vmatpush3.bf16.msra.mxu1 %v339_v12 }
  0x2b   :  { %316 = vmatprep.subr.bf16.mxu1 %v393_v0 }
  0x2e   :  { %317 = vmatpush3.bf16.msra.mxu1 %v340_v13 }
  0x2f   :  { %318 = vmatprep.subr.bf16.mxu1 %v393_v0 }
  0x32   :  { %319 = vmatpush3.bf16.msra.mxu1 %v341_v14 }
  0xf8   :  { %v111_v16 = vpop.f32.mrb[0].mxu0 }
  0xf9   :  { %v124_v18 = vmul.f32 %v267_v15, %v111_v16  ;;  %v302_v19 = vpop.f32.mrb[1].mxu0 }
  0xfa   :  { %v114_v20 = vpop.f32.mrb[2].mxu0 }
  0xfb   :  { %v132_v21 = vadd.f32 %v268_v17, %v124_v18  ;;  %v303_v22 = vpop.f32.mrb[3].mxu0 }
  0xfd   :  { %v133_v23 = vmax.f32 %v132_v21, 0.0 }
  0xff   :  { %v134_v24 = vpack.c.bf16 %v133_v23, %v133_v23 }
 0x101   :  { %321 = vmatmul.mubr.bf16.vlgmr.msra.gmra.mrb[0].mxu1 %v134_v24 }
 0x1d4   :  { %v240_v26 = vpop.f32.mrb[0].mxu1 }
 0x1d5   :  { %v241_v27 = vadd.f32 %v269_v25, %v240_v26  ;;  %v322_v28 = vpop.f32.mrb[1].mxu1 }
 0x1d6   :  { %v243_v29 = vpop.f32.mrb[2].mxu1 }
 0x1d7   :  { %246 = vst [vmem:[#allocation5] sm:$0xff] %v241_v27  ;;  %v323_v30 = vpop.f32.mrb[3].mxu1 }
 0x1d8   :  { %375 = shalt.err (!%p372_p12)
}
 0x1d9   :  { %s376_s5 = scalar_lea.hbm %s485_s6, 128 }
 0x1da   :  { %p377_p13 = scmp.ne.s32.totalorder %s485_s6, %s376_s5  ;;  %p380_p0 = scmp.lt.u32.totalorder %s376_s5, %s485_s6 }
 0x1dc   :  { %p382_p1 = pnand %p380_p0, %p377_p13 }
 0x1de   :  { %385 = shalt.err (!%p382_p1)
}
 0x1df   :  { %256 = dma.vmem_to_hbm [thread:$0]  %s254_s25, 128, %s485_s6, [#allocation4]  }
 0x1e0   :  { %388 = dma.done.wait [#allocation4], 128  }
 0x1e1   :  { %389 = vsyncadd [#allocation4], 4294967168 }
 0x1e2   :  { %260 = vsyncpa [#allocation3], 1 }
 0x1e3   :  { %261 = vsyncpa [#allocation4], 1 }

// kernel: mlp_forward.2
= control target key start
LH: loop header
LB: loop body
LE: loop exit
PB: predicated region body
PF: predicated region fallthrough
CT: control target
= control target key end

     0   :  { %7 = vsyncpa [#allocation3], 0  ;;  %s368_s9 = smov [#allocation2]   ;;  %s422_s0 = inlined_call_operand.vmem [shape: f32[8,64], index: 0, kind: input, shape index: {}]   ;;  %s423_s1 = inlined_call_operand.hbm [shape: bf16[64,128], index: 1, kind: input, shape index: {}]   ;;  %s424_s2 = inlined_call_operand.vmem [shape: f32[1,256], index: 2, kind: output, shape index: {}]  }
   0x1   :  { %s21_s10 = sshll.u32 %s368_s9, 4  ;;  %s344_s13 = scalar_lea.hbm %s423_s1, 512  ;;  %s22_s10 = int_to_ptr.vmem [resolvable:$true] %s21_s10 }
   0x2   :  { %p345_p0 = scmp.ne.s32.totalorder %s423_s1, %s344_s13  ;;  %p348_p1 = scmp.lt.u32.totalorder %s344_s13, %s423_s1 }
   0x4   :  { %p350_p2 = pnand %p348_p1, %p345_p0 }
   0x6   :  { %353 = shalt.err (!%p350_p2)
}
   0x7   :  { %s354_s18 = scalar_lea.vmem %s22_s10, 512  ;;  %p359_p4 = scmp.lt.s32.totalorder %s22_s10, %s22_s10 }
   0x8   :  { %p355_p3 = scmp.ne.s32.totalorder %s22_s10, %s354_s18  ;;  %p360_p5 = scmp.lt.s32.totalorder %s354_s18, %s354_s18 }
   0xa   :  { %p361_p6 = por %p360_p5, %p359_p4 }
   0xc   :  { %p362_p7 = pnand %p361_p6, %p355_p3 }
   0xe   :  { %365 = shalt.err (!%p362_p7)
}
   0xf   :  { %s369_s19 = smov 64   ;;  %s370_s20 = smov 4  }
  0x10   :  { %27 = dma.hbm_to_vmem [thread:$0]  %s423_s1, 512, %s22_s10, [#allocation3], %s369_s19, %s369_s19, %s370_s20  }
  0x11   :  { %366 = dma.done.wait [#allocation3], 512  }
  0x12   :  { %367 = vsyncadd [#allocation3], 4294966784  ;;  %v371_v0 = vmov 0.0   ;;  %vm372_vm0 = vmmov 0   ;;  %v340_v1 = vld [vmem:[#allocation2] sm:$0xff]   ;;  %v341_v2 = vld [vmem:[#allocation2 + $0x8] sm:$0xff]   ;;  %v47_v7 = vlaneseq }
  0x13   :  { %312 = vmatprep.subr.bf16.mxu0 %v371_v0  ;;  %320 = vmatprep.mubr.msk.bf16.mxu0 %vm372_vm0, %v371_v0  ;;  %v342_v3 = vld [vmem:[#allocation2 + $0x10] sm:$0xff]   ;;  %v343_v4 = vld [vmem:[#allocation2 + $0x18] sm:$0xff]   ;;  %v52_v5 = vld [vmem:[%s422_s0] sm:$0xff]  ;;  %vm86_vm1 = vcmask 523264   ;;  %vm130_vm3 = vcmask 64512   ;;  %v373_v12 = vmov 1.0  }
  0x14   :  { %324 = vmatprep.subr.mxu1 %v371_v0  ;;  %326 = vmatprep.mubr.msk.f32.mxu1 %vm372_vm0, %v371_v0  ;;  %v53_v6 = vpack.c.bf16 %v52_v5, %v52_v5  ;;  %vm49_vm2 = vcmp.lt.s32.totalorder %v47_v7, 256  ;;  %vm279_vm4 = vcmp.lt.s32.totalorder %v47_v7, 128 }
  0x15   :  { %313 = vmatpush3.bf16.msra.mxu0 %v340_v1  ;;  %51 = vst.msk [vmem:[%s424_s2] sm:$0x3] %vm49_vm2, %v371_v0 }
  0x16   :  { %314 = vmatprep.subr.bf16.mxu0 %v371_v0 }
  0x19   :  { %315 = vmatpush3.bf16.msra.mxu0 %v341_v2 }
  0x1a   :  { %316 = vmatprep.subr.bf16.mxu0 %v371_v0 }
  0x1c   :  { %v275_v14 = vld [vmem:[%s424_s2] sm:$0x1]  ;;  %v282_v18 = vld [vmem:[%s424_s2 + $0x1] sm:$0x1] }
  0x1d   :  { %317 = vmatpush3.bf16.msra.mxu0 %v342_v3 }
  0x1e   :  { %318 = vmatprep.subr.bf16.mxu0 %v371_v0 }
  0x21   :  { %319 = vmatpush3.bf16.msra.mxu0 %v343_v4 }
  0x24   :  { %321 = vmatmul.mubr.msk.bf16.vlgmr.msra.gmra.mrb[0].mxu0 %vm86_vm1, %v53_v6 }
  0xf7   :  { %v124_v8 = vpop.f32.mrb[0].mxu0 }
  0xf8   :  { %v204_v9 = vmul.f32 %v124_v8, %v124_v8  ;;  %v322_v10 = vpop.f32.mrb[1].mxu0  ;;  %325 = vmatpush3.msra.mxu1 %v124_v8 }
  0xf9   :  { %v127_v11 = vpop.f32.mrb[2].mxu0  ;;  %327 = vmatmul.mubr.msk.f32.vlgmr.msra.gmra.mrb[0].mxu1 %vm130_vm3, %v373_v12  ;;  %329 = vmatprep.subr.mxu1 %v371_v0 }
  0xfa   :  { %v323_v13 = vpop.f32.mrb[3].mxu0  ;;  %330 = vmatpush3.msra.mxu1 %v204_v9  ;;  %331 = vmatprep.mubr.msk.f32.mxu1 %vm372_vm0, %v371_v0 }
  0xfd   :  { %332 = vmatmul.mubr.msk.f32.vlgmr.msra.gmra.mrb[2].mxu1 %vm130_vm3, %v373_v12 }
 0x1cc   :  { %v200_v15 = vpop.f32.mrb[0].mxu1 }
 0x1cd   :  { %v276_v16 = vadd.f32 %v275_v14, %v200_v15  ;;  %v328_v17 = vpop.f32.mrb[1].mxu1 }
 0x1cf   :  { %281 = vst.msk [vmem:[%s424_s2] sm:$0x1] %vm279_vm4, %v276_v16 }
 0x1d0   :  { %v271_v19 = vpop.f32.mrb[2].mxu1 }
 0x1d1   :  { %v283_v20 = vadd.f32 %v282_v18, %v271_v19  ;;  %v333_v21 = vpop.f32.mrb[3].mxu1 }
 0x1d3   :  { %284 = vst.msk [vmem:[%s424_s2 + $0x1] sm:$0x1] %vm279_vm4, %v283_v20 }
 0x1d4   :  { %289 = vsyncpa [#allocation3], 1 }

</bundles_post_ra>
